<compile_context>
chip_gen: v5e
topology: v5e:2x2
jax: 0.10.0
libtpu: 0.0.40
codegen_flags: <defaults>
</compile_context>

<pallas_src>
import jax
import jax.numpy as jnp
from jax.experimental import pallas as pl
from jax.experimental.pallas import tpu as pltpu


def _round_up(x, m):
    return -(-x // m) * m


def _wsum_max_kernel(counts_ref, feats_ref, w_ref, b_ref, out_ref,
                     acc_sum, acc_max):
    # counts_ref: (BT, 1) int32 VMEM        feats_ref: (BT, NT, M) native dtype
    # w_ref:      (1, M)  f32 VMEM          b_ref:     (1, 1) f32 SMEM
    # out_ref:    (BT, 2*M)                 acc_sum/acc_max: (BT, M) f32 scratch
    ni = pl.program_id(1)
    n_steps = pl.num_programs(1)
    BT, NT, M = feats_ref.shape

    @pl.when(ni == 0)
    def _():
        acc_sum[...] = jnp.zeros_like(acc_sum)
        acc_max[...] = jnp.full_like(acc_max, jnp.finfo(jnp.float32).min)

    x = feats_ref[...]                       # native dtype (BT, NT, M)
    counts = counts_ref[...]                 # (BT, 1) int32

    # Validity mask rebuilt in-kernel from node counts (no mask HBM stream).
    # Also covers the ragged tails of the last node/batch blocks.
    node_idx = jax.lax.broadcasted_iota(jnp.int32, (BT, NT, 1), 1) + ni * NT
    valid = node_idx < counts.reshape(BT, 1, 1)          # (BT, NT, 1) bool

    # Per-node gate: Linear(M -> 1) + sigmoid, score accumulated in f32.
    if M <= 128:
        # VPU multiply + XLU lane-reduce; avoids a lane-sparse (.., 1) MXU dot.
        w_row = w_ref[...].reshape(1, 1, M).astype(x.dtype)
        scores = jnp.sum(x * w_row, axis=-1, keepdims=True,
                         dtype=jnp.float32)               # (BT, NT, 1) f32
    else:
        x2 = x.reshape(BT * NT, M)
        scores = jax.lax.dot_general(
            x2, w_ref[...],
            dimension_numbers=(((1,), (1,)), ((), ())),
            preferred_element_type=jnp.float32).reshape(BT, NT, 1)
    scores = scores + b_ref[0, 0]
    gate = jnp.where(valid, jax.nn.sigmoid(scores), 0.0)  # fold mask into gate

    # Weighted-sum path: mask x itself so NaN/garbage in invalid rows (ragged
    # tails, non-zero padding) cannot leak through 0 * NaN.
    x_sum = jnp.where(valid, x, 0)
    acc_sum[...] += jnp.sum(x_sum * gate, axis=1)         # f32 accumulate

    # Max path stays in the native dtype; single (BT, M) upcast per step.
    neg = jnp.finfo(x.dtype).min
    tile_max = jnp.max(jnp.where(valid, x, neg), axis=1)  # (BT, M) native
    acc_max[...] = jnp.maximum(acc_max[...], tile_max.astype(jnp.float32))

    @pl.when(ni == n_steps - 1)
    def _():
        # Empty graphs -> 0 for the max readout (matches dgl.max_nodes).
        hmax = jnp.where(counts > 0, acc_max[...], 0.0)
        out_ref[...] = jnp.concatenate(
            [acc_sum[...], hmax], axis=-1).astype(out_ref.dtype)


def weighted_sum_and_max(feats, num_nodes, weight, bias, *,
                         b_tile=32, n_tile=1024):
    """feats: (B, N_max, M) f32/bf16, num_nodes: (B,) or (B, 1) int32,
    weight: (M, 1) f32, bias: scalar/(1, 1) f32.  Returns (B, 2*M) in feats.dtype."""
    B, N, M = feats.shape
    itemsize = jnp.dtype(feats.dtype).itemsize
    align = 16 if itemsize == 2 else 8        # bf16 packs 16 rows / sublane tile

    # ---- tile selection ----------------------------------------------------
    b_tile = _round_up(max(1, min(b_tile, B)), align)
    n_tile = _round_up(max(1, min(n_tile, N)), align)
    # Keep >= 2 batch blocks when possible: the "parallel" batch-block axis is
    # what shards across v7x's two TensorCores.
    if B >= 2 * align and pl.cdiv(B, b_tile) < 2:
        b_tile = _round_up(pl.cdiv(B, 2), align)
    # Cap the feats block at ~12 MiB so the double-buffered feats stream plus
    # accumulators/outputs fits comfortably inside v7x's 64 MiB physical VMEM
    # (and is still large enough to hit the HBM roofline on v5e/v6e).
    max_block_bytes = 12 * 1024 * 1024
    while b_tile * n_tile * M * itemsize > max_block_bytes and n_tile > align:
        n_tile = _round_up(n_tile // 2, align)
    while b_tile * n_tile * M * itemsize > max_block_bytes and b_tile > align:
        b_tile = _round_up(b_tile // 2, align)

    grid = (pl.cdiv(B, b_tile), pl.cdiv(N, n_tile))

    # Pad only the tiny per-graph node-count vector; feats streams un-padded
    # with ragged last blocks handled by Pallas + in-kernel masking.
    Bp = grid[0] * b_tile
    counts = num_nodes.astype(jnp.int32).reshape(B, 1)
    if Bp != B:
        counts = jnp.pad(counts, ((0, Bp - B), (0, 0)))

    w_row = weight.reshape(1, M).astype(jnp.float32)       # lane-major weight
    b_scalar = jnp.asarray(bias, jnp.float32).reshape(1, 1)

    # VMEM budget derived from the actual block sizes (double-buffered feats
    # stream is the dominant term); clamp to a range that is safe on all gens.
    feats_block = b_tile * n_tile * M * itemsize
    out_block = b_tile * 2 * M * itemsize
    scratch_bytes = 2 * b_tile * M * 4
    needed = (2 * feats_block + 2 * out_block + 2 * b_tile * 4
              + scratch_bytes + (1 << 20))
    vmem_limit = int(min(max(needed * 3 // 2, 32 << 20), 96 << 20))

    out = pl.pallas_call(
        _wsum_max_kernel,
        out_shape=jax.ShapeDtypeStruct((B, 2 * M), feats.dtype),
        grid_spec=pltpu.PrefetchScalarGridSpec(
            num_scalar_prefetch=0,
            grid=grid,
            in_specs=[
                pl.BlockSpec((b_tile, 1), lambda bi, ni: (bi, 0)),              # node counts
                pl.BlockSpec((b_tile, n_tile, M), lambda bi, ni: (bi, ni, 0)),  # feats tile
                pl.BlockSpec((1, M), lambda bi, ni: (0, 0)),                    # linear weight
                pl.BlockSpec(memory_space=pltpu.MemorySpace.SMEM),              # bias scalar
            ],
            out_specs=pl.BlockSpec((b_tile, 2 * M), lambda bi, ni: (bi, 0)),    # [sum | max]
            scratch_shapes=[
                pltpu.VMEM((b_tile, M), jnp.float32),   # running weighted sum
                pltpu.VMEM((b_tile, M), jnp.float32),   # running max
            ],
        ),
        compiler_params=pltpu.CompilerParams(
            dimension_semantics=("parallel", "arbitrary"),
            vmem_limit_bytes=vmem_limit,
        ),
    )(counts, feats, w_row, b_scalar)
    return out


def _reference(feats, num_nodes, weight, bias):
    B, N, M = feats.shape
    mask = (jnp.arange(N)[None, :] < num_nodes.reshape(B, 1)).astype(jnp.float32)[..., None]
    node_w = jax.nn.sigmoid(jnp.einsum("bnm,mo->bno", feats, weight)
                            + jnp.asarray(bias).reshape(())[None, None, None])
    wsum = jnp.sum(feats * node_w * mask, axis=1)
    neg = jnp.finfo(jnp.float32).min
    hmax = jnp.max(jnp.where(mask > 0, feats, neg), axis=1)
    hmax = jnp.where(num_nodes.reshape(B, 1) > 0, hmax, 0.0)
    return jnp.concatenate([wsum, hmax], axis=-1)


if __name__ == "__main__":
    key = jax.random.PRNGKey(0)
    B, N_max, M = 2, 16, 32          # 2 graphs, up to 16 nodes each, in_feats=32

    k_feats, k_w = jax.random.split(key)
    feats = jax.random.normal(k_feats, (B, N_max, M), dtype=jnp.float32)

    # Graph sizes: graph 0 has 10 nodes, graph 1 has 16 nodes.
    num_nodes = jnp.array([[10], [16]], dtype=jnp.int32)
    mask = (jnp.arange(N_max)[None, :] < num_nodes).astype(jnp.float32)[..., None]
    feats = feats * mask             # zero out padding, as a padded DGL batch would

    # Deterministic WeightAndSum params: Linear(in_feats=M, out=1)
    weight = jax.random.normal(k_w, (M, 1), dtype=jnp.float32) * 0.1
    bias = jnp.full((1, 1), 0.05, dtype=jnp.float32)

    out = weighted_sum_and_max(feats, num_nodes, weight, bias)
    out = jax.block_until_ready(out)

    ref = _reference(feats, num_nodes, weight, bias)
    assert out.shape == (B, 2 * M)
    assert jnp.allclose(out, ref, atol=1e-5, rtol=1e-5)

    print("KERNEL_OK")
</pallas_src>

<mosaic_0001>
module attributes {stable_mosaic.version = 11 : i64} {
  func.func @_wsum_max_kernel(%arg0: i32, %arg1: i32, %arg2: memref<8x1xi32, #tpu.memory_space<vmem>>, %arg3: memref<8x16x32xf32, #tpu.memory_space<vmem>>, %arg4: memref<1x32xf32, #tpu.memory_space<vmem>>, %arg5: memref<1x1xf32, #tpu.memory_space<smem>>, %arg6: memref<8x64xf32, #tpu.memory_space<vmem>>, %arg7: memref<8x32xf32, #tpu.memory_space<vmem>>, %arg8: memref<8x32xf32, #tpu.memory_space<vmem>>) attributes {dimension_semantics = [#tpu.dimension_semantics<parallel>, #tpu.dimension_semantics<arbitrary>], iteration_bounds = array<i64: 1, 1>, scalar_prefetch = 0 : i64, scratch_operands = 2 : i64, tpu.core_type = #tpu.core_type<tc>, window_params = [{transform_indices = @transform_0, window_bounds = array<i64: 8, 1>}, {transform_indices = @transform_1, window_bounds = array<i64: 8, 16, 32>}, {pipeline_mode = #tpu.pipeline_mode<synchronous>, transform_indices = @transform_2, window_bounds = array<i64: 1, 32>}, {transform_indices = @transform_3, window_bounds = array<i64: 1, 1>}, {transform_indices = @transform_4, window_bounds = array<i64: 8, 64>}]} {
    %c0_i32 = arith.constant 0 : i32
    %0 = arith.cmpi eq, %arg1, %c0_i32 : i32
    %1 = arith.extui %0 : i1 to i32
    %c0_i32_0 = arith.constant 0 : i32
    %2 = arith.cmpi ne, %1, %c0_i32_0 : i32
    scf.if %2 {
      %cst_25 = arith.constant 0.000000e+00 : f32
      %50 = vector.broadcast %cst_25 : f32 to vector<8x32xf32>
      %c0_26 = arith.constant 0 : index
      %c0_27 = arith.constant 0 : index
      %51 = vector.load %arg7[%c0_26, %c0_27] : memref<8x32xf32, #tpu.memory_space<vmem>>, vector<8x32xf32>
      tpu.vector_store %arg7[%c0_26, %c0_27], %50 {strides = array<i32>} : memref<8x32xf32, #tpu.memory_space<vmem>>, vector<8x32xf32>,
      %cst_28 = arith.constant -3.40282347E+38 : f32
      %52 = vector.broadcast %cst_28 : f32 to vector<8x32xf32>
      %c0_29 = arith.constant 0 : index
      %c0_30 = arith.constant 0 : index
      %53 = vector.load %arg8[%c0_29, %c0_30] : memref<8x32xf32, #tpu.memory_space<vmem>>, vector<8x32xf32>
      tpu.vector_store %arg8[%c0_29, %c0_30], %52 {strides = array<i32>} : memref<8x32xf32, #tpu.memory_space<vmem>>, vector<8x32xf32>,
    } else {
    }
    %c0 = arith.constant 0 : index
    %c0_1 = arith.constant 0 : index
    %c0_2 = arith.constant 0 : index
    %3 = vector.load %arg3[%c0, %c0_1, %c0_2] : memref<8x16x32xf32, #tpu.memory_space<vmem>>, vector<8x16x32xf32>
    %c0_3 = arith.constant 0 : index
    %c0_4 = arith.constant 0 : index
    %4 = vector.load %arg2[%c0_3, %c0_4] : memref<8x1xi32, #tpu.memory_space<vmem>>, vector<8x1xi32>
    %5 = tpu.iota {dimensions = array<i32: 1>} : vector<8x16x1xi32>
    %c16_i32 = arith.constant 16 : i32
    %6 = arith.muli %arg1, %c16_i32 : i32
    %7 = vector.broadcast %6 : i32 to vector<8x16x1xi32>
    %8 = arith.addi %5, %7 : vector<8x16x1xi32>
    %9 = vector.shape_cast %4 : vector<8x1xi32> to vector<8x1x1xi32>
    %10 = vector.broadcast %9 : vector<8x1x1xi32> to vector<8x16x1xi32>
    %11 = arith.cmpi slt, %8, %10 : vector<8x16x1xi32>
    %c0_5 = arith.constant 0 : index
    %c0_6 = arith.constant 0 : index
    %12 = vector.load %arg4[%c0_5, %c0_6] : memref<1x32xf32, #tpu.memory_space<vmem>>, vector<1x32xf32>
    %13 = vector.shape_cast %12 : vector<1x32xf32> to vector<1x1x32xf32>
    %14 = vector.broadcast %13 : vector<1x1x32xf32> to vector<8x16x32xf32>
    %15 = arith.mulf %3, %14 : vector<8x16x32xf32>
    %cst = arith.constant dense<0.000000e+00> : vector<8x16xf32>
    %16 = vector.multi_reduction <add>, %15, %cst [2] : vector<8x16x32xf32> to vector<8x16xf32>
    %17 = vector.shape_cast %16 : vector<8x16xf32> to vector<8x16x1xf32>
    %c0_7 = arith.constant 0 : index
    %c0_8 = arith.constant 0 : index
    %18 = memref.load %arg5[%c0_7, %c0_8] : memref<1x1xf32, #tpu.memory_space<smem>>
    %19 = vector.broadcast %18 : f32 to vector<8x16x1xf32>
    %20 = arith.addf %17, %19 : vector<8x16x1xf32>
    %21 = arith.negf %20 : vector<8x16x1xf32>
    %22 = math.exp %21 : vector<8x16x1xf32>
    %cst_9 = arith.constant 1.000000e+00 : f32
    %23 = vector.broadcast %cst_9 : f32 to vector<8x16x1xf32>
    %24 = arith.addf %23, %22 : vector<8x16x1xf32>
    %25 = arith.divf %23, %24 : vector<8x16x1xf32>
    %cst_10 = arith.constant 0.000000e+00 : f32
    %26 = vector.broadcast %cst_10 : f32 to vector<8x16x1xf32>
    %27 = arith.select %11, %25, %26 : vector<8x16x1xi1>, vector<8x16x1xf32>
    %c0_i32_11 = arith.constant 0 : i32
    %28 = arith.sitofp %c0_i32_11 : i32 to f32
    %29 = vector.shape_cast %11 : vector<8x16x1xi1> to vector<8x16x1xi1>
    %30 = vector.broadcast %29 : vector<8x16x1xi1> to vector<8x16x32xi1>
    %31 = vector.broadcast %28 : f32 to vector<8x16x32xf32>
    %32 = arith.select %30, %3, %31 : vector<8x16x32xi1>, vector<8x16x32xf32>
    %c0_12 = arith.constant 0 : index
    %c0_13 = arith.constant 0 : index
    %33 = vector.load %arg7[%c0_12, %c0_13] : memref<8x32xf32, #tpu.memory_space<vmem>>, vector<8x32xf32>
    %34 = vector.broadcast %27 : vector<8x16x1xf32> to vector<8x16x32xf32>
    %35 = arith.mulf %32, %34 : vector<8x16x32xf32>
    %cst_14 = arith.constant dense<0.000000e+00> : vector<8x32xf32>
    %36 = vector.multi_reduction <add>, %35, %cst_14 [1] : vector<8x16x32xf32> to vector<8x32xf32>
    %37 = arith.addf %33, %36 : vector<8x32xf32>
    %c0_15 = arith.constant 0 : index
    %c0_16 = arith.constant 0 : index
    %38 = vector.load %arg7[%c0_15, %c0_16] : memref<8x32xf32, #tpu.memory_space<vmem>>, vector<8x32xf32>
    tpu.vector_store %arg7[%c0_15, %c0_16], %37 {strides = array<i32>} : memref<8x32xf32, #tpu.memory_space<vmem>>, vector<8x32xf32>,
    %cst_17 = arith.constant -3.40282347E+38 : f32
    %39 = vector.shape_cast %11 : vector<8x16x1xi1> to vector<8x16x1xi1>
    %40 = vector.broadcast %39 : vector<8x16x1xi1> to vector<8x16x32xi1>
    %41 = vector.broadcast %cst_17 : f32 to vector<8x16x32xf32>
    %42 = arith.select %40, %3, %41 : vector<8x16x32xi1>, vector<8x16x32xf32>
    %cst_18 = arith.constant dense<0xFF800000> : vector<8x32xf32>
    %43 = vector.multi_reduction <maximumf>, %42, %cst_18 [1] : vector<8x16x32xf32> to vector<8x32xf32>
    %c0_19 = arith.constant 0 : index
    %c0_20 = arith.constant 0 : index
    %44 = vector.load %arg8[%c0_19, %c0_20] : memref<8x32xf32, #tpu.memory_space<vmem>>, vector<8x32xf32>
    %45 = arith.maximumf %44, %43 : vector<8x32xf32>
    %c0_21 = arith.constant 0 : index
    %c0_22 = arith.constant 0 : index
    %46 = vector.load %arg8[%c0_21, %c0_22] : memref<8x32xf32, #tpu.memory_space<vmem>>, vector<8x32xf32>
    tpu.vector_store %arg8[%c0_21, %c0_22], %45 {strides = array<i32>} : memref<8x32xf32, #tpu.memory_space<vmem>>, vector<8x32xf32>,
    %c0_i32_23 = arith.constant 0 : i32
    %47 = arith.cmpi eq, %arg1, %c0_i32_23 : i32
    %48 = arith.extui %47 : i1 to i32
    %c0_i32_24 = arith.constant 0 : i32
    %49 = arith.cmpi ne, %48, %c0_i32_24 : i32
    scf.if %49 {
      %c0_i32_25 = arith.constant 0 : i32
      %50 = vector.broadcast %c0_i32_25 : i32 to vector<8x1xi32>
      %51 = arith.cmpi sgt, %4, %50 : vector<8x1xi32>
      %c0_26 = arith.constant 0 : index
      %c0_27 = arith.constant 0 : index
      %52 = vector.load %arg8[%c0_26, %c0_27] : memref<8x32xf32, #tpu.memory_space<vmem>>, vector<8x32xf32>
      %cst_28 = arith.constant 0.000000e+00 : f32
      %53 = vector.shape_cast %51 : vector<8x1xi1> to vector<8x1xi1>
      %54 = vector.broadcast %53 : vector<8x1xi1> to vector<8x32xi1>
      %55 = vector.broadcast %cst_28 : f32 to vector<8x32xf32>
      %56 = arith.select %54, %52, %55 : vector<8x32xi1>, vector<8x32xf32>
      %c0_29 = arith.constant 0 : index
      %c0_30 = arith.constant 0 : index
      %57 = vector.load %arg7[%c0_29, %c0_30] : memref<8x32xf32, #tpu.memory_space<vmem>>, vector<8x32xf32>
      %58 = tpu.concatenate %57, %56 in 1 : vector<8x32xf32>, vector<8x32xf32> -> vector<8x64xf32>
      %c0_31 = arith.constant 0 : index
      %c0_32 = arith.constant 0 : index
      %59 = vector.load %arg6[%c0_31, %c0_32] : memref<8x64xf32, #tpu.memory_space<vmem>>, vector<8x64xf32>
      tpu.vector_store %arg6[%c0_31, %c0_32], %58 {strides = array<i32>} : memref<8x64xf32, #tpu.memory_space<vmem>>, vector<8x64xf32>,
    } else {
    }
    return
  }
  func.func @transform_0(%arg0: i32, %arg1: i32) -> (i32, i32) {
    %c0_i32 = arith.constant 0 : i32
    %c0_i32_0 = arith.constant 0 : i32
    return %arg0, %c0_i32 : i32, i32
  }
  func.func @transform_1(%arg0: i32, %arg1: i32) -> (i32, i32, i32) {
    %c0_i32 = arith.constant 0 : i32
    %c0_i32_0 = arith.constant 0 : i32
    return %arg0, %arg1, %c0_i32 : i32, i32, i32
  }
  func.func @transform_2(%arg0: i32, %arg1: i32) -> (i32, i32) {
    %c0_i32 = arith.constant 0 : i32
    %c0_i32_0 = arith.constant 0 : i32
    %c0_i32_1 = arith.constant 0 : i32
    return %c0_i32, %c0_i32_0 : i32, i32
  }
  func.func @transform_3(%arg0: i32, %arg1: i32) -> (i32, i32) {
    %c0_i32 = arith.constant 0 : i32
    %c0_i32_0 = arith.constant 0 : i32
    %c0_i32_1 = arith.constant 0 : i32
    return %c0_i32, %c0_i32_0 : i32, i32
  }
  func.func @transform_4(%arg0: i32, %arg1: i32) -> (i32, i32) {
    %c0_i32 = arith.constant 0 : i32
    %c0_i32_0 = arith.constant 0 : i32
    return %arg0, %c0_i32 : i32, i32
  }
}

</mosaic_0001>

<bundles_post_ra>
// kernel: tpu_custom_call.1
= control target key start
LH: loop header
LB: loop body
LE: loop exit
PB: predicated region body
PF: predicated region fallthrough
CT: control target
= control target key end

     0   :  { %10 = vsyncpa [#allocation6], 0  ;;  %s1970_s0 = inlined_call_operand.vmem [shape: s32[8,1], index: 0, kind: input, shape index: {}]   ;;  %s1971_s1 = inlined_call_operand.hbm [shape: f32[2,16,32], index: 1, kind: input, shape index: {}]   ;;  %s1972_s2 = inlined_call_operand.vmem [shape: f32[1,32], index: 2, kind: input, shape index: {}]   ;;  %s1973_s3 = inlined_call_operand.<no memory space> [shape: f32[1,1], index: 3, kind: input, shape index: {}]   ;;  %s1974_s4 = inlined_call_operand.hbm [shape: f32[2,64], index: 4, kind: output, shape index: {}]  }
   0x1   :  { %11 = vsyncpa [#allocation7], 0 }
   0x2   :  { %17 = vsyncadd [#allocation6], 1536  ;;  %s18_s17 = sshll.u32 %s1971_s1, 4  ;;  %s1100_s18 = smov [#allocation5]   ;;  %s19_s17 = int_to_ptr.hbm [resolvable:$true] %s18_s17 }
   0x3   :  { %s20_s19 = sshll.u32 %s1100_s18, 4  ;;  %s1101_s20 = smov 128   ;;  %s21_s19 = int_to_ptr.vmem [resolvable:$true] %s20_s19 }
   0x4   :  { %s1102_s21 = smov 8  }
   0x5   :  { %26 = dma.hbm_to_vmem [thread:$0]  %s19_s17, 512, %s21_s19, [#allocation6], %s1101_s20, %s1101_s20, %s1102_s21  }
   0x6   :  { %1096 = dma.done.wait [#allocation6], 2048  }
   0x7   :  { %1097 = vsyncadd [#allocation6], 4294965248  ;;  %v1137_v0 = vld [vmem:[#allocation5 + $0x20] sm:$0xff]  ;;  %v1142_v1 = vld [vmem:[%s1972_s2] ss:$0 sm:$0xff]  ;;  %vm1985_vm0 = vcmask 261120   ;;  %v59_v50 = vlaneseq }
   0x8   :  { %v1144_v2 = vld [vmem:[#allocation5 + $0x10] sm:$0xff]  ;;  %v1146_v3 = vld [vmem:[#allocation5] sm:$0xff]  ;;  %v105_v4 = vmul.f32 %v1142_v1, %v1137_v0  ;;  %v1154_v7 = vld [vmem:[#allocation5 + $0x28] sm:$0xff]  ;;  %v1103_v25 = vmov 0  }
   0x9   :  { %v103_v5 = vmul.f32 %v1142_v1, %v1144_v2  ;;  %v101_v6 = vmul.f32 %v1142_v1, %v1146_v3  ;;  %v1156_v8 = vld [vmem:[#allocation5 + $0x18] sm:$0xff]  ;;  %v1161_v12 = vld [vmem:[#allocation5 + $0x8] sm:$0xff]  ;;  %v106_v13 = vmul.f32 %v1142_v1, %v1154_v7  ;;  %v50_v19 = vld [vmem:[#allocation5 + $0x40] sm:$0xff]  ;;  %965 = vset.pattern.permute.xlu2 %v1103_v25  ;;  %964 = vset.pattern.permute.xlu1 %v1103_v25  ;;  %v1210_v51 = vshrl.u32 %v59_v50, 7 }
   0xa   :  { %v130_v9 = vsel %vm1985_vm0, %v105_v4, 0.0  ;;  %v104_v14 = vmul.f32 %v1142_v1, %v1156_v8  ;;  %v102_v15 = vmul.f32 %v1142_v1, %v1161_v12  ;;  %v1172_v20 = vld [vmem:[#allocation5 + $0x38] sm:$0xff]  ;;  %v1174_v21 = vld [vmem:[#allocation5 + $0x30] sm:$0xff]  ;;  %v109_v22 = vmul.f32 %v1142_v1, %v50_v19  ;;  %966 = vset.pattern.permute.xlu0 %v1103_v25  ;;  %v1187_v31 = vld [vmem:[#allocation5 + $0x48] sm:$0xff] }
   0xb   :  { %v124_v10 = vsel %vm1985_vm0, %v103_v5, 0.0  ;;  %v118_v11 = vsel %vm1985_vm0, %v101_v6, 0.0  ;;  %131 = vadd.xlane.f32.xlu2 %v130_v9  ;;  %v133_v16 = vsel %vm1985_vm0, %v106_v13, 0.0  ;;  %v108_v23 = vmul.f32 %v1142_v1, %v1172_v20  ;;  %v53_v29 = vld [vmem:[#allocation5 + $0x58] sm:$0xff]  ;;  %v52_v30 = vld [vmem:[#allocation5 + $0x50] sm:$0xff]  ;;  %v1196_v39 = vld [vmem:[#allocation5 + $0x68] sm:$0xff] }
   0xc   :  { %125 = vadd.xlane.f32.xlu1 %v124_v10  ;;  %119 = vadd.xlane.f32.xlu0 %v118_v11  ;;  %v127_v17 = vsel %vm1985_vm0, %v104_v14, 0.0  ;;  %v121_v18 = vsel %vm1985_vm0, %v102_v15, 0.0  ;;  %v107_v24 = vmul.f32 %v1142_v1, %v1174_v21  ;;  %v142_v26 = vsel %vm1985_vm0, %v109_v22, 0.0  ;;  %v56_v38 = vld [vmem:[#allocation5 + $0x70] sm:$0xff]  ;;  %v1198_v40 = vld [vmem:[#allocation5 + $0x60] sm:$0xff]  ;;  %v57_v47 = vld [vmem:[#allocation5 + $0x78] sm:$0xff] }
   0xd   :  { %v139_v27 = vsel %vm1985_vm0, %v108_v23, 0.0  ;;  %v112_v32 = vmul.f32 %v1142_v1, %v53_v29  ;;  %v111_v33 = vmul.f32 %v1142_v1, %v52_v30  ;;  %v110_v34 = vmul.f32 %v1142_v1, %v1187_v31  ;;  %v1215_v52 = vld [vmem:[%s1970_s0] sm:$0xff] }
   0xe   :  { %v136_v28 = vsel %vm1985_vm0, %v107_v24, 0.0  ;;  %v115_v41 = vmul.f32 %v1142_v1, %v56_v38  ;;  %v114_v42 = vmul.f32 %v1142_v1, %v1196_v39  ;;  %v113_v43 = vmul.f32 %v1142_v1, %v1198_v40 }
   0xf   :  { %v151_v35 = vsel %vm1985_vm0, %v112_v32, 0.0  ;;  %v148_v36 = vsel %vm1985_vm0, %v111_v33, 0.0  ;;  %v145_v37 = vsel %vm1985_vm0, %v110_v34, 0.0  ;;  %v116_v48 = vmul.f32 %v1142_v1, %v57_v47 }
  0x10   :  { %v160_v44 = vsel %vm1985_vm0, %v115_v41, 0.0  ;;  %v157_v45 = vsel %vm1985_vm0, %v114_v42, 0.0  ;;  %v154_v46 = vsel %vm1985_vm0, %v113_v43, 0.0  ;;  %v1218_v53 = vadd.s32 8, %v1210_v51 }
  0x11   :  { %v163_v49 = vsel %vm1985_vm0, %v116_v48, 0.0  ;;  %v73_v54 = vperm.slane %v1215_v52, 0  ;;  %v66_v55 = vrot.slane %v1215_v52, 1  ;;  %v67_v59 = vrot.slane %v1215_v52, 2 }
  0x12   :  { %v69_v63 = vrot.slane %v1215_v52, 4  ;;  %v68_v5 = vrot.slane %v1215_v52, 3  ;;  %v71_v11 = vrot.slane %v1215_v52, 6  ;;  %v70_v19 = vrot.slane %v1215_v52, 5 }
  0x13   :  { %134 = vadd.xlane.f32.xlu2 %v133_v16  ;;  %vm1223_vm1 = vcmp.lt.s32.totalorder %v1218_v53, %v73_v54  ;;  %vm1228_vm2 = vcmp.lt.s32.totalorder %v1210_v51, %v73_v54  ;;  %v1232_v58 = vperm.slane %v66_v55, 0  ;;  %v1243_v62 = vperm.slane %v67_v59, 0 }
  0x14   :  { %128 = vadd.xlane.f32.xlu1 %v127_v17  ;;  %122 = vadd.xlane.f32.xlu0 %v121_v18  ;;  %v505_v60 = vsel %vm1223_vm1, 1, %v1103_v25  ;;  %v504_v61 = vsel %vm1228_vm2, 1, %v1103_v25  ;;  %v1254_v4 = vperm.slane %v69_v63, 0  ;;  %v1267_v10 = vperm.slane %v68_v5, 0 }
  0x15   :  { %vm83_vm3 = vcmp.lt.s32.totalorder %v1210_v51, %v1232_v58  ;;  %vm84_vm4 = vcmp.lt.s32.totalorder %v1218_v53, %v1232_v58  ;;  %vm85_vm5 = vcmp.lt.s32.totalorder %v1210_v51, %v1243_v62  ;;  %vm1984_vm7 = vcmp.lt.s32.totalorder %v1218_v53, %v1243_v62 }
  0x16   :  { %v506_v1 = vsel %vm83_vm3, 1, %v1103_v25  ;;  %v507_v6 = vsel %vm84_vm4, 1, %v1103_v25  ;;  %v508_v9 = vsel %vm85_vm5, 1, %v1103_v25  ;;  %vm1980_vm6 = vcmp.lt.s32.totalorder %v1218_v53, %v1254_v4 }
  0x17   :  { %v513_v13 = vsel %vm1980_vm6, 1, %v1103_v25  ;;  %vm1983_vm8 = vcmp.lt.s32.totalorder %v1210_v51, %v1267_v10  ;;  %v1278_v14 = vperm.slane %v71_v11, 0  ;;  %v509_v15 = vsel %vm1984_vm7, 1, %v1103_v25 }
  0x18   :  { %v510_v16 = vsel %vm1983_vm8, 1, %v1103_v25  ;;  %v72_v17 = vrot.slane %v1215_v52, 7  ;;  %vm88_vm10 = vcmp.lt.s32.totalorder %v1218_v53, %v1267_v10  ;;  %vm1981_vm11 = vcmp.lt.s32.totalorder %v1210_v51, %v1254_v4 }
  0x19   :  { %vm1976_vm9 = vcmp.lt.s32.totalorder %v1210_v51, %v1278_v14  ;;  %v511_v23 = vsel %vm88_vm10, 1, %v1103_v25  ;;  %v512_v24 = vsel %vm1981_vm11, 1, %v1103_v25  ;;  %vm1979_vm15 = vcmp.lt.s32.totalorder %v1218_v53, %v1278_v14 }
  0x1a   :  { %v516_v18 = vsel %vm1976_vm9, 1, %v1103_v25  ;;  %v1300_v22 = vperm.slane %v72_v17, 0  ;;  %v517_v30 = vsel %vm1979_vm15, 1, %v1103_v25  ;;  %vm904_vm9 = vcmp.gt.s32.totalorder %v1215_v52, 0 }
  0x1b   :  { %143 = vadd.xlane.f32.xlu2 %v142_v26  ;;  %v1310_v26 = vperm.slane %v70_v19, 0  ;;  %v906_v33 = vsel %vm904_vm9, 1, %v1103_v25  ;;  %v1347_v34 = vstv %s1973_s3  ;;  %s1105_s3 = smov 32  }
  0x1c   :  { %140 = vadd.xlane.f32.xlu1 %v139_v27  ;;  %137 = vadd.xlane.f32.xlu0 %v136_v28  ;;  %vm1975_vm12 = vcmp.lt.s32.totalorder %v1218_v53, %v1300_v22 }
  0x1d   :  { %v519_v27 = vsel %vm1975_vm12, 1, %v1103_v25  ;;  %vm1982_vm13 = vcmp.lt.s32.totalorder %v1210_v51, %v1310_v26  ;;  %vm1978_vm14 = vcmp.lt.s32.totalorder %v1218_v53, %v1310_v26  ;;  %vm1977_vm12 = vcmp.lt.s32.totalorder %v1210_v51, %v1300_v22 }
  0x1e   :  { %v514_v28 = vsel %vm1982_vm13, 1, %v1103_v25  ;;  %v515_v29 = vsel %vm1978_vm14, 1, %v1103_v25  ;;  %v518_v32 = vsel %vm1977_vm12, 1, %v1103_v25 }
  0x23   :  { %152 = vadd.xlane.f32.xlu2 %v151_v35 }
  0x24   :  { %149 = vadd.xlane.f32.xlu1 %v148_v36  ;;  %146 = vadd.xlane.f32.xlu0 %v145_v37 }
  0x2b   :  { %161 = vadd.xlane.f32.xlu2 %v160_v44 }
  0x2c   :  { %158 = vadd.xlane.f32.xlu1 %v157_v45  ;;  %155 = vadd.xlane.f32.xlu0 %v154_v46 }
  0x34   :  { %164 = vadd.xlane.f32.xlu0 %v163_v49 }
  0x43   :  { %524 = vperm.xlu2 %965, %v505_v60  }
  0x45   :  { %521 = vperm.xlu1 %964, %v504_v61  }
  0x48   :  { %527 = vperm.xlu0 %966, %v506_v1  }
  0x4b   :  { %530 = vperm.xlu2 %965, %v507_v6  }
  0x4d   :  { %533 = vperm.xlu1 %964, %v508_v9  }
  0x50   :  { %548 = vperm.xlu0 %966, %v513_v13  }
  0x53   :  { %536 = vperm.xlu2 %965, %v509_v15  }
  0x55   :  { %539 = vperm.xlu1 %964, %v510_v16  }
  0x58   :  { %557 = vperm.xlu0 %966, %v516_v18  }
  0x5b   :  { %542 = vperm.xlu2 %965, %v511_v23  }
  0x5d   :  { %545 = vperm.xlu1 %964, %v512_v24  }
  0x60   :  { %566 = vperm.xlu0 %966, %v519_v27  }
  0x63   :  { %551 = vperm.xlu2 %965, %v514_v28  }
  0x65   :  { %554 = vperm.xlu1 %964, %v515_v29  }
  0x6b   :  { %560 = vperm.xlu2 %965, %v517_v30  }
  0x6d   :  { %563 = vperm.xlu1 %964, %v518_v32  }
  0x75   :  { %908 = vperm.xlu1 %964, %v906_v33  }
  0x7e   :  { %v132_v35 = vpop.xlane.xlu2 %131 }
  0x7f   :  { %v126_v36 = vpop.xlane.xlu1 %125  ;;  %v172_v37 = vadd.f32 %v1347_v34, %v132_v35  ;;  %v120_v41 = vpop.xlane.xlu0 %119 }
  0x80   :  { %v170_v38 = vadd.f32 %v1347_v34, %v126_v36  ;;  %v168_v42 = vadd.f32 %v1347_v34, %v120_v41 }
  0x81   :  { %v943_v43 = vmul.f32 -1.442695, %v172_v37 }
  0x82   :  { %v941_v44 = vmul.f32 -1.442695, %v170_v38  ;;  %v939_v45 = vmul.f32 -1.442695, %v168_v42 }
  0x83   :  { %968 = vpow2.f32 %v943_v43 }
  0x84   :  { %970 = vpow2.f32 %v941_v44 }
  0x85   :  { %972 = vpow2.f32 %v939_v45 }
  0x86   :  { %v135_v25 = vpop.xlane.xlu2 %134 }
  0x87   :  { %v129_v46 = vpop.xlane.xlu1 %128  ;;  %v123_v48 = vpop.xlane.xlu0 %122  ;;  %v173_v52 = vadd.f32 %v1347_v34, %v135_v25 }
  0x88   :  { %v171_v47 = vadd.f32 %v1347_v34, %v129_v46  ;;  %v169_v49 = vadd.f32 %v1347_v34, %v123_v48 }
  0x89   :  { %v969_v50 = vpop.eup %968  ;;  %v944_v5 = vmul.f32 -1.442695, %v173_v52 }
  0x8a   :  { %v971_v54 = vpop.eup %970  ;;  %v1355_v55 = vadd.f32 1.0, %v969_v50  ;;  %v942_v61 = vmul.f32 -1.442695, %v171_v47  ;;  %v940_v1 = vmul.f32 -1.442695, %v169_v49 }
  0x8b   :  { %v973_v59 = vpop.eup %972  ;;  %v1357_v60 = vadd.f32 1.0, %v971_v54 }
  0x8c   :  { %974 = vrcp.f32 %v1355_v55  ;;  %v1360_v63 = vadd.f32 1.0, %v973_v59  ;;  %vm313_vm12 = vweird.f32 %v1355_v55  ;;  %v317_v24 = vand.u32 2147483647, %v1355_v55 }
  0x8d   :  { %976 = vrcp.f32 %v1357_v60  ;;  %v287_v17 = vand.u32 2147483647, %v1357_v60  ;;  %vm283_vm9 = vweird.f32 %v1357_v60  ;;  %v289_v28 = vand.u32 2147483648, %v1357_v60 }
  0x8e   :  { %978 = vrcp.f32 %v1360_v63  ;;  %v144_v6 = vpop.xlane.xlu2 %143  ;;  %vm253_vm14 = vweird.f32 %v1360_v63  ;;  %v257_v29 = vand.u32 2147483647, %v1360_v63  ;;  %v259_v37 = vand.u32 2147483648, %v1360_v63 }
  0x8f   :  { %v141_v9 = vpop.xlane.xlu1 %140  ;;  %980 = vpow2.f32 %v942_v61  ;;  %v176_v11 = vadd.f32 %v1347_v34, %v144_v6  ;;  %v138_v15 = vpop.xlane.xlu0 %137  ;;  %vm1379_vm15 = vcmp.eq.f32.partialorder %v287_v17, 8.507059e+37  ;;  %v319_v43 = vand.u32 2147483648, %v1355_v55 }
  0x90   :  { %v175_v13 = vadd.f32 %v1347_v34, %v141_v9  ;;  %982 = vpow2.f32 %v940_v1  ;;  %v174_v16 = vadd.f32 %v1347_v34, %v138_v15  ;;  %v260_v15 = vor.u32 1.1754944e-38, %v259_v37 }
  0x91   :  { %984 = vpow2.f32 %v944_v5  ;;  %v947_v23 = vmul.f32 -1.442695, %v176_v11  ;;  %v290_v17 = vor.u32 1.1754944e-38, %v289_v28  ;;  %vm1405_vm0 = vcmp.eq.f32.partialorder %v257_v29, 8.507059e+37 }
  0x92   :  { %v946_v18 = vmul.f32 -1.442695, %v175_v13  ;;  %v1368_v19 = vpop.eup %974  ;;  %v945_v33 = vmul.f32 -1.442695, %v174_v16  ;;  %v320_v28 = vor.u32 1.1754944e-38, %v319_v43 }
  0x93   :  { %v977_v27 = vpop.eup %976  ;;  %v309_v30 = vmul.f32 %v1368_v19, %v1355_v55  ;;  %vm314_vm6 = vweird.f32 %v1368_v19 }
  0x94   :  { %v979_v32 = vpop.eup %978  ;;  %v279_v35 = vmul.f32 %v977_v27, %v1357_v60  ;;  %986 = vpow2.f32 %v946_v18  ;;  %vm284_vm13 = vweird.f32 %v977_v27 }
  0x95   :  { %v981_v38 = vpop.eup %980  ;;  %v249_v41 = vmul.f32 %v979_v32, %v1360_v63  ;;  %v310_v42 = vsub.f32 1.0, %v309_v30  ;;  %988 = vpow2.f32 %v947_v23  ;;  %vm254_vm11 = vweird.f32 %v979_v32  ;;  %vm285_vm7 = vmor %vm283_vm9, %vm284_vm13 }
  0x96   :  { %v983_v44 = vpop.eup %982  ;;  %v1386_v45 = vadd.f32 1.0, %v981_v38  ;;  %v153_v25 = vpop.xlane.xlu2 %152  ;;  %v280_v47 = vsub.f32 1.0, %v279_v35  ;;  %vm1399_vm8 = vmor %vm253_vm14, %vm254_vm11 }
  0x97   :  { %v150_v46 = vpop.xlane.xlu1 %149  ;;  %v985_v48 = vpop.eup %984  ;;  %v1389_v49 = vadd.f32 1.0, %v983_v44  ;;  %v250_v54 = vsub.f32 1.0, %v249_v41  ;;  %v311_v61 = vmul.f32 %v1368_v19, %v310_v42  ;;  %v179_v1 = vadd.f32 %v1347_v34, %v153_v25  ;;  %vm1418_vm11 = vmor %vm313_vm12, %vm314_vm6 }
  0x98   :  { %v178_v50 = vadd.f32 %v1347_v34, %v150_v46  ;;  %v147_v52 = vpop.xlane.xlu0 %146  ;;  %990 = vrcp.f32 %v1386_v45  ;;  %v281_v59 = vmul.f32 %v977_v27, %v280_v47  ;;  %v1410_v35 = vadd.f32 1.0, %v985_v48 }
  0x99   :  { %992 = vpow2.f32 %v945_v33  ;;  %v251_v6 = vmul.f32 %v979_v32, %v250_v54  ;;  %v177_v9 = vadd.f32 %v1347_v34, %v147_v52  ;;  %v312_v30 = vadd.f32 %v1368_v19, %v311_v61 }
  0x9a   :  { %v949_v5 = vmul.f32 -1.442695, %v178_v50  ;;  %994 = vrcp.f32 %v1389_v49  ;;  %v282_v11 = vadd.f32 %v977_v27, %v281_v59  ;;  %v987_v16 = vpop.eup %986  ;;  %v950_v29 = vmul.f32 -1.442695, %v179_v1 }
  0x9b   :  { %v252_v18 = vadd.f32 %v979_v32, %v251_v6  ;;  %v989_v33 = vpop.eup %988  ;;  %v1412_v63 = vadd.f32 1.0, %v987_v16  ;;  %vm318_vm6 = vcmp.eq.f32.partialorder %v317_v24, 8.507059e+37  ;;  %v302_v57 = vand.u32 2147483647, %v1386_v45 }
  0x9c   :  { %v286_v38 = vsel %vm285_vm7, %v977_v27, %v282_v11  ;;  %996 = vpow2.f32 %v949_v5  ;;  %v948_v27 = vmul.f32 -1.442695, %v177_v9  ;;  %v1444_v59 = vadd.f32 1.0, %v989_v33 }
  0x9d   :  { %v291_v37 = vsel %vm1379_vm15, %v290_v17, %v286_v38  ;;  %v256_v41 = vsel %vm1399_vm8, %v979_v32, %v252_v18  ;;  %998 = vrcp.f32 %v1412_v63  ;;  %v316_v32 = vsel %vm1418_vm11, %v1368_v19, %v312_v30 }
  0x9e   :  { %v991_v42 = vpop.eup %990  ;;  %v162_v44 = vpop.xlane.xlu2 %161  ;;  %v490_v46 = vsel %vm83_vm3, %v291_v37, 0.0  ;;  %v261_v43 = vsel %vm1405_vm0, %v260_v15, %v256_v41  ;;  %1000 = vrcp.f32 %v1410_v35  ;;  %vm298_vm0 = vweird.f32 %v1386_v45 }
  0x9f   :  { %v159_v25 = vpop.xlane.xlu1 %158  ;;  %v993_v47 = vpop.eup %992  ;;  %613 = vperm.xlu0 %966, %v490_v46   ;;  %v488_v36 = vsel %vm1228_vm2, %v261_v43, 0.0  ;;  %v294_v54 = vmul.f32 %v991_v42, %v1386_v45  ;;  %1002 = vpow2.f32 %v950_v29  ;;  %v321_v55 = vsel %vm318_vm6, %v320_v28, %v316_v32 }
  0xa0   :  { %v1439_v48 = vpop.eup %994  ;;  %v181_v50 = vadd.f32 %v1347_v34, %v159_v25  ;;  %603 = vperm.xlu2 %965, %v488_v36   ;;  %v156_v52 = vpop.xlane.xlu0 %155  ;;  %v1448_v19 = vadd.f32 1.0, %v993_v47  ;;  %1004 = vpow2.f32 %v948_v27  ;;  %v182_v1 = vadd.f32 %v1347_v34, %v162_v44 }
  0xa1   :  { %v295_v24 = vsub.f32 1.0, %v294_v54  ;;  %v180_v5 = vadd.f32 %v1347_v34, %v156_v52  ;;  %v304_v6 = vand.u32 2147483648, %v1386_v45  ;;  %v264_v9 = vmul.f32 %v1439_v48, %v1389_v49 }
  0xa2   :  { %v997_v61 = vpop.eup %996  ;;  %v952_v13 = vmul.f32 -1.442695, %v181_v50  ;;  %vm299_vm2 = vweird.f32 %v991_v42  ;;  %vm268_vm3 = vweird.f32 %v1389_v49  ;;  %vm269_vm7 = vweird.f32 %v1439_v48 }
  0xa3   :  { %v1455_v11 = vpop.eup %998  ;;  %v296_v15 = vmul.f32 %v991_v42, %v295_v24  ;;  %v265_v16 = vsub.f32 1.0, %v264_v9  ;;  %v272_v17 = vand.u32 2147483647, %v1389_v49  ;;  %v274_v18 = vand.u32 2147483648, %v1389_v49  ;;  %vm300_vm8 = vmor %vm298_vm0, %vm299_vm2 }
  0xa4   :  { %v1461_v23 = vpop.eup %1000  ;;  %v1463_v30 = vadd.f32 1.0, %v997_v61  ;;  %v492_v33 = vsel %vm85_vm5, %v321_v55, 0.0  ;;  %v354_v60 = vmul.f32 %v1455_v11, %v1412_v63  ;;  %1006 = vrcp.f32 %v1448_v19  ;;  %vm1481_vm12 = vmor %vm268_vm3, %vm269_vm7 }
  0xa5   :  { %v297_v38 = vadd.f32 %v991_v42, %v296_v15  ;;  %v1003_v28 = vpop.eup %1002  ;;  %v953_v29 = vmul.f32 -1.442695, %v182_v1  ;;  %v305_v41 = vor.u32 1.1754944e-38, %v304_v6  ;;  %v266_v27 = vmul.f32 %v1439_v48, %v265_v16 }
  0xa6   :  { %v1471_v37 = vpop.permute.xlu2 %524  ;;  %v1005_v44 = vpop.eup %1004  ;;  %1008 = vpow2.f32 %v952_v13  ;;  %vm303_vm5 = vcmp.eq.f32.partialorder %v302_v57, 8.507059e+37  ;;  %v275_v43 = vor.u32 1.1754944e-38, %v274_v18  ;;  %vm273_vm13 = vcmp.eq.f32.partialorder %v272_v17, 8.507059e+37 }
  0xa7   :  { %623 = vperm.xlu0 %966, %v492_v33   ;;  %v301_v25 = vsel %vm300_vm8, %v991_v42, %v297_v38  ;;  %1010 = vrcp.f32 %v1444_v59  ;;  %v267_v47 = vadd.f32 %v1439_v48, %v266_v27  ;;  %v951_v36 = vmul.f32 -1.442695, %v180_v5 }
  0xa8   :  { %v306_v45 = vsel %vm303_vm5, %v305_v41, %v301_v25  ;;  %1012 = vrcp.f32 %v1463_v30  ;;  %v355_v32 = vsub.f32 1.0, %v354_v60  ;;  %v1491_v49 = vadd.f32 1.0, %v1005_v44  ;;  %v165_v55 = vpop.xlane.xlu0 %164 }
  0xa9   :  { %v491_v42 = vsel %vm84_vm4, %v306_v45, 0.0  ;;  %vm569_vm14 = vcmp.eq.s32.totalorder %v1471_v37, 1  ;;  %v271_v50 = vsel %vm1481_vm12, %v1439_v48, %v267_v47  ;;  %v364_v52 = vand.u32 2147483648, %v1412_v63 }
  0xaa   :  { %618 = vperm.xlu2 %965, %v491_v42   ;;  %v1498_v54 = vadd.f32 1.0, %v1003_v28  ;;  %1014 = vpow2.f32 %v953_v29  ;;  %v276_v57 = vsel %vm273_vm13, %v275_v43, %v271_v50  ;;  %vm328_vm15 = vweird.f32 %v1410_v35  ;;  %v1501_v58 = vpop.eup %1006 }
  0xab   :  { %v489_v24 = vsel %vm1223_vm1, %v276_v57, 0.0  ;;  %v356_v61 = vmul.f32 %v1455_v11, %v355_v32  ;;  %vm359_vm4 = vweird.f32 %v1455_v11  ;;  %v362_v48 = vand.u32 2147483647, %v1412_v63 }
  0xac   :  { %v1009_v1 = vpop.eup %1008  ;;  %1016 = vpow2.f32 %v951_v36  ;;  %v795_v5 = vsel %vm569_vm14, %v1161_v12, -3.4028235e+38  ;;  %608 = vperm.xlu1 %964, %v489_v24   ;;  %vm358_vm9 = vweird.f32 %v1412_v63  ;;  %v324_v6 = vmul.f32 %v1461_v23, %v1410_v35 }
  0xad   :  { %v1514_v56 = vpop.eup %1010  ;;  %1018 = vrcp.f32 %v1491_v49  ;;  %v183_v9 = vadd.f32 %v1347_v34, %v165_v55  ;;  %v357_v13 = vadd.f32 %v1455_v11, %v356_v61  ;;  %v365_v15 = vor.u32 1.1754944e-38, %v364_v52  ;;  %vm360_vm1 = vmor %vm358_vm9, %vm359_vm4 }
  0xae   :  { %v1519_v16 = vpop.eup %1012  ;;  %v325_v17 = vsub.f32 1.0, %v324_v6  ;;  %vm329_vm11 = vweird.f32 %v1461_v23  ;;  %v332_v12 = vand.u32 2147483647, %v1410_v35  ;;  %v334_v63 = vand.u32 2147483648, %v1410_v35  ;;  %v1526_v33 = vpop.permute.xlu2 %530 }
  0xaf   :  { %v1524_v18 = vadd.f32 1.0, %v1009_v1  ;;  %v361_v38 = vsel %vm360_vm1, %v1455_v11, %v357_v13  ;;  %vm363_vm6 = vcmp.eq.f32.partialorder %v362_v48, 8.507059e+37  ;;  %v339_v34 = vmul.f32 %v1501_v58, %v1448_v19  ;;  %vm1538_vm2 = vmor %vm328_vm15, %vm329_vm11 }
  0xb0   :  { %v1015_v60 = vpop.eup %1014  ;;  %v366_v28 = vsel %vm363_vm6, %v365_v15, %v361_v38  ;;  %v326_v29 = vmul.f32 %v1461_v23, %v325_v17  ;;  %v335_v41 = vor.u32 1.1754944e-38, %v334_v63  ;;  %vm343_vm0 = vweird.f32 %v1448_v19 }
  0xb1   :  { %v495_v27 = vsel %vm88_vm10, %v366_v28, 0.0  ;;  %v340_v11 = vsub.f32 1.0, %v339_v34  ;;  %vm344_vm3 = vweird.f32 %v1501_v58  ;;  %v347_v25 = vand.u32 2147483647, %v1448_v19 }
  0xb2   :  { %v1017_v46 = vpop.eup %1016  ;;  %638 = vperm.xlu0 %966, %v495_v27   ;;  %v327_v43 = vadd.f32 %v1461_v23, %v326_v29  ;;  %vm333_vm7 = vcmp.eq.f32.partialorder %v332_v12, 8.507059e+37  ;;  %v349_v45 = vand.u32 2147483648, %v1448_v19  ;;  %v399_v47 = vmul.f32 %v1519_v16, %v1463_v30  ;;  %vm1560_vm8 = vmor %vm343_vm0, %vm344_vm3 }
  0xb3   :  { %v1548_v35 = vpop.eup %1018  ;;  %1020 = vrcp.f32 %v1498_v54  ;;  %vm2012_vm10 = vcmask 261120   ;;  %v954_v42 = vmul.f32 -1.442695, %v183_v9  ;;  %v341_v32 = vmul.f32 %v1501_v58, %v340_v11 }
  0xb4   :  { %v1552_v36 = vsel %vm2012_vm10, %v795_v5, -inf  ;;  %v331_v50 = vsel %vm1538_vm2, %v1461_v23, %v327_v43  ;;  %vm1564_vm5 = vcmp.eq.f32.partialorder %v347_v25, 8.507059e+37  ;;  %v350_v55 = vor.u32 1.1754944e-38, %v349_v45  ;;  %vm2021_vm3 = vmmov %vm2012_vm10 }
  0xb5   :  { %v400_v61 = vsub.f32 1.0, %v399_v47  ;;  %v336_v48 = vsel %vm333_vm7, %v335_v41, %v331_v50  ;;  %v342_v1 = vadd.f32 %v1501_v58, %v341_v32  ;;  %v407_v23 = vand.u32 2147483647, %v1463_v30 }
  0xb6   :  { %v1573_v19 = vadd.f32 1.0, %v1015_v60  ;;  %1022 = vrcp.f32 %v1524_v18  ;;  %v1576_v5 = vadd.f32 1.0, %v1017_v46  ;;  %vm2017_vm13 = vcmp.lt.s32.totalorder %v1218_v53, %v1243_v62  ;;  %v1598_v63 = vpop.permute.xlu2 %536 }
  0xb7   :  { %v1568_v24 = vpop.permute.xlu1 %521  ;;  %v493_v6 = vsel %vm2017_vm13, %v336_v48, 0.0  ;;  %1024 = vpow2.f32 %v954_v42  ;;  %v346_v9 = vsel %vm1560_vm8, %v1501_v58, %v342_v1  ;;  %v401_v13 = vmul.f32 %v1519_v16, %v400_v61 }
  0xb8   :  { %vm568_vm12 = vcmp.eq.s32.totalorder %v1568_v24, 1  ;;  %628 = vperm.xlu2 %965, %v493_v6   ;;  %vm404_vm15 = vweird.f32 %v1519_v16  ;;  %v351_v15 = vsel %vm1564_vm5, %v350_v55, %v346_v9  ;;  %vm403_vm4 = vweird.f32 %v1463_v30 }
  0xb9   :  { %v794_v17 = vsel %vm568_vm12, %v1146_v3, -3.4028235e+38  ;;  %v409_v62 = vand.u32 2147483648, %v1463_v30  ;;  %v1593_v12 = vpop.eup %1020  ;;  %vm2018_vm9 = vcmp.lt.s32.totalorder %v1210_v51, %v1267_v10  ;;  %v402_v38 = vadd.f32 %v1519_v16, %v401_v13  ;;  %vm405_vm11 = vmor %vm403_vm4, %vm404_vm15 }
  0xba   :  { %v494_v58 = vsel %vm2018_vm9, %v351_v15, 0.0  ;;  %vm1601_vm1 = vcmp.eq.f32.partialorder %v407_v23, 8.507059e+37  ;;  %v369_v3 = vmul.f32 %v1514_v56, %v1444_v59  ;;  %vm373_vm6 = vweird.f32 %v1444_v59  ;;  %v1621_v25 = vpop.permute.xlu0 %527 }
  0xbb   :  { %633 = vperm.xlu1 %964, %v494_v58   ;;  %v410_v30 = vor.u32 1.1754944e-38, %v409_v62  ;;  %vm374_vm0 = vweird.f32 %v1514_v56  ;;  %v377_v10 = vand.u32 2147483647, %v1444_v59  ;;  %v406_v60 = vsel %vm405_vm11, %v1519_v16, %v402_v38  ;;  %vm2027_vm11 = vmmov %vm2021_vm3 }
  0xbc   :  { %v370_v28 = vsub.f32 1.0, %v369_v3  ;;  %v379_v29 = vand.u32 2147483648, %v1444_v59  ;;  %v384_v41 = vmul.f32 %v1548_v35, %v1491_v49  ;;  %v1614_v27 = vpop.eup %1022  ;;  %1026 = vrcp.f32 %v1576_v5  ;;  %vm1634_vm8 = vmor %vm373_vm6, %vm374_vm0 }
  0xbd   :  { %vm571_vm2 = vcmp.eq.s32.totalorder %v1526_v33, 1  ;;  %v810_v44 = vsel %vm2021_vm3, %v794_v17, -inf  ;;  %v411_v11 = vsel %vm1601_vm1, %v410_v30, %v406_v60  ;;  %v1025_v46 = vpop.eup %1024  ;;  %vm2022_vm7 = vcmp.lt.s32.totalorder %v1210_v51, %v1310_v26  ;;  %vm2028_vm6 = vmmov %vm2021_vm3  ;;  %v1040_v33 = vld [vmem:[#allocation5 + $0x20] sm:$0xff] }
  0xbe   :  { %v498_v43 = vsel %vm2022_vm7, %v411_v11, 0.0  ;;  %v371_v45 = vmul.f32 %v1514_v56, %v370_v28  ;;  %v385_v47 = vsub.f32 1.0, %v384_v41  ;;  %vm388_vm10 = vweird.f32 %v1491_v49  ;;  %v1675_v58 = vpop.permute.xlu2 %542 }
  0xbf   :  { %v1623_v16 = vpop.permute.xlu1 %533  ;;  %653 = vperm.xlu0 %966, %v498_v43   ;;  %v380_v32 = vor.u32 1.1754944e-38, %v379_v29  ;;  %vm389_vm5 = vweird.f32 %v1548_v35  ;;  %v392_v50 = vand.u32 2147483647, %v1491_v49  ;;  %v394_v52 = vand.u32 2147483648, %v1491_v49 }
  0xc0   :  { %v372_v57 = vadd.f32 %v1514_v56, %v371_v45  ;;  %vm378_vm13 = vcmp.eq.f32.partialorder %v377_v10, 8.507059e+37  ;;  %v386_v55 = vmul.f32 %v1548_v35, %v385_v47  ;;  %vm570_vm15 = vcmp.eq.s32.totalorder %v1621_v25, 1  ;;  %vm1648_vm9 = vmor %vm388_vm10, %vm389_vm5 }
  0xc1   :  { %v797_v59 = vsel %vm571_vm2, %v1156_v8, -3.4028235e+38  ;;  %vm573_vm4 = vcmp.eq.s32.totalorder %v1598_v63, 1  ;;  %v395_v48 = vor.u32 1.1754944e-38, %v394_v52  ;;  %v796_v49 = vsel %vm570_vm15, %v1144_v2, -3.4028235e+38  ;;  %vm2031_vm10 = vmmov %vm2028_vm6 }
  0xc2   :  { %v376_v1 = vsel %vm1634_vm8, %v1514_v56, %v372_v57  ;;  %v387_v23 = vadd.f32 %v1548_v35, %v386_v55  ;;  %vm393_vm1 = vcmp.eq.f32.partialorder %v392_v50, 8.507059e+37  ;;  %v819_v8 = vsel %vm2027_vm11, %v796_v49, -inf  ;;  %v1660_v6 = vpop.eup %1026  ;;  %vm2032_vm8 = vmmov %vm2028_vm6 }
  0xc3   :  { %v1662_v9 = vadd.f32 1.0, %v1025_v46  ;;  %v812_v13 = vmax.f32 %v810_v44, %v1552_v36  ;;  %v381_v15 = vsel %vm378_vm13, %v380_v32, %v376_v1  ;;  %v820_v17 = vsel %vm2028_vm6, %v797_v59, -inf  ;;  %v1695_v44 = vpop.permute.xlu0 %548 }
  0xc4   :  { %v799_v2 = vsel %vm573_vm4, %v1154_v7, -3.4028235e+38  ;;  %vm2029_vm0 = vcmp.lt.s32.totalorder %v1210_v51, %v1254_v4  ;;  %v391_v62 = vsel %vm1648_vm9, %v1548_v35, %v387_v23  ;;  %v821_v36 = vmax.f32 %v819_v8, %v820_v17 }
  0xc5   :  { %v496_v56 = vsel %vm2029_vm0, %v381_v15, 0.0  ;;  %v396_v38 = vsel %vm393_vm1, %v395_v48, %v391_v62  ;;  %vm572_vm3 = vcmp.eq.s32.totalorder %v1623_v16, 1  ;;  %1028 = vrcp.f32 %v1573_v19 }
  0xc6   :  { %643 = vperm.xlu2 %965, %v496_v56   ;;  %vm2030_vm7 = vcmp.lt.s32.totalorder %v1218_v53, %v1254_v4  ;;  %v798_v3 = vsel %vm572_vm3, %v1137_v0, -3.4028235e+38  ;;  %v444_v35 = vmul.f32 %v1614_v27, %v1524_v18  ;;  %1030 = vrcp.f32 %v1662_v9  ;;  %v1728_v23 = vpop.permute.xlu2 %551 }
  0xc7   :  { %v1678_v34 = vpop.permute.xlu1 %539  ;;  %v497_v7 = vsel %vm2030_vm7, %v396_v38, 0.0  ;;  %v829_v30 = vsel %vm2031_vm10, %v799_v2, -inf  ;;  %v813_v10 = vrot.slane %v812_v13, 4  ;;  %v828_v60 = vsel %vm2032_vm8, %v798_v3, -inf }
  0xc8   :  { %648 = vperm.xlu1 %964, %v497_v7   ;;  %v830_v28 = vmax.f32 %v828_v60, %v829_v30  ;;  %v445_v29 = vsub.f32 1.0, %v444_v35  ;;  %v452_v4 = vand.u32 2147483647, %v1524_v18  ;;  %v414_v41 = vmul.f32 %v1593_v12, %v1498_v54 }
  0xc9   :  { %v822_v0 = vrot.slane %v821_v36, 4  ;;  %vm1989_vm5 = vcmp.eq.s32.totalorder %v1675_v58, 1  ;;  %vm449_vm13 = vweird.f32 %v1614_v27  ;;  %v454_v11 = vand.u32 2147483648, %v1524_v18 }
  0xca   :  { %v446_v46 = vmul.f32 %v1614_v27, %v445_v29  ;;  %v415_v43 = vsub.f32 1.0, %v414_v41  ;;  %vm418_vm9 = vweird.f32 %v1498_v54  ;;  %vm419_vm1 = vweird.f32 %v1593_v12 }
  0xcb   :  { %vm448_vm11 = vweird.f32 %v1524_v18  ;;  %v422_v45 = vand.u32 2147483647, %v1498_v54  ;;  %v424_v47 = vand.u32 2147483648, %v1498_v54  ;;  %v429_v42 = vmul.f32 %v1660_v6, %v1576_v5  ;;  %v1708_v32 = vpop.eup %1028  ;;  %vm1718_vm7 = vmor %vm418_vm9, %vm419_vm1  ;;  %v1758_v60 = vpop.permute.xlu0 %557 }
  0xcc   :  { %v831_v50 = vrot.slane %v830_v28, 4  ;;  %v447_v52 = vadd.f32 %v1614_v27, %v446_v46  ;;  %vm1711_vm6 = vmor %vm448_vm11, %vm449_vm13  ;;  %vm453_vm0 = vcmp.eq.f32.partialorder %v452_v4, 8.507059e+37  ;;  %v416_v55 = vmul.f32 %v1593_v12, %v415_v43  ;;  %v1716_v18 = vpop.eup %1030 }
  0xcd   :  { %v455_v59 = vor.u32 1.1754944e-38, %v454_v11  ;;  %v425_v61 = vor.u32 1.1754944e-38, %v424_v47  ;;  %v430_v48 = vsub.f32 1.0, %v429_v42  ;;  %vm433_vm10 = vweird.f32 %v1576_v5 }
  0xce   :  { %v451_v49 = vsel %vm1711_vm6, %v1614_v27, %v447_v52  ;;  %v417_v1 = vadd.f32 %v1593_v12, %v416_v55  ;;  %vm423_vm8 = vcmp.eq.f32.partialorder %v422_v45, 8.507059e+37  ;;  %vm434_vm13 = vweird.f32 %v1660_v6 }
  0xcf   :  { %v1730_v8 = vpop.permute.xlu1 %545  ;;  %v1732_v15 = vmax.f32 %v812_v13, %v813_v10  ;;  %v456_v17 = vsel %vm453_vm0, %v455_v59, %v451_v49  ;;  %v431_v2 = vmul.f32 %v1660_v6, %v430_v48  ;;  %v437_v56 = vand.u32 2147483647, %v1576_v5  ;;  %vm1744_vm1 = vmor %vm433_vm10, %vm434_vm13 }
  0xd0   :  { %v1736_v62 = vmax.f32 %v821_v36, %v822_v0  ;;  %vm2037_vm9 = vcmp.lt.s32.totalorder %v1218_v53, %v1278_v14  ;;  %v421_v38 = vsel %vm1718_vm7, %v1593_v12, %v417_v1  ;;  %v439_v13 = vand.u32 2147483648, %v1576_v5 }
  0xd1   :  { %v501_v27 = vsel %vm2037_vm9, %v456_v17, 0.0  ;;  %v801_v3 = vsel %vm1989_vm5, %v1172_v20, -3.4028235e+38  ;;  %v426_v36 = vsel %vm423_vm8, %v425_v61, %v421_v38  ;;  %v432_v35 = vadd.f32 %v1660_v6, %v431_v2 }
  0xd2   :  { %668 = vperm.xlu0 %966, %v501_v27   ;;  %vm438_vm11 = vcmp.eq.f32.partialorder %v437_v56, 8.507059e+37  ;;  %v1753_v30 = vmax.f32 %v830_v28, %v831_v50  ;;  %vm2040_vm6 = vcmp.lt.s32.totalorder %v1218_v53, %v1310_v26  ;;  %v440_v10 = vor.u32 1.1754944e-38, %v439_v13 }
  0xd3   :  { %v499_v12 = vsel %vm2040_vm6, %v426_v36, 0.0  ;;  %v436_v5 = vsel %vm1744_vm1, %v1660_v6, %v432_v35  ;;  %v815_v20 = vrot.slane %v1732_v15, 2  ;;  %v824_v29 = vrot.slane %v1736_v62, 2  ;;  %v1816_v2 = vpop.permute.xlu0 %566  ;;  %v1839_v35 = vld [vmem:[#allocation5 + $0x40] sm:$0xff] }
  0xd4   :  { %658 = vperm.xlu2 %965, %v499_v12   ;;  %vm2041_vm0 = vcmask 261120   ;;  %v441_v28 = vsel %vm438_vm11, %v440_v10, %v436_v5  ;;  %vm2042_vm7 = vcmp.lt.s32.totalorder %v1210_v51, %v1278_v14  ;;  %vm1986_vm10 = vcmp.eq.s32.totalorder %v1695_v44, 1  ;;  %v1846_v10 = vld [vmem:[#allocation5 + $0x50] sm:$0xff] }
  0xd5   :  { %v838_v4 = vsel %vm2041_vm0, %v801_v3, -inf  ;;  %v500_v26 = vsel %vm2042_vm7, %v441_v28, 0.0  ;;  %vm1987_vm8 = vcmp.eq.s32.totalorder %v1678_v34, 1  ;;  %v459_v41 = vmul.f32 %v1708_v32, %v1573_v19  ;;  %vm2043_vm1 = vmmov %vm2041_vm0 }
  0xd6   :  { %v833_v6 = vrot.slane %v1753_v30, 2  ;;  %663 = vperm.xlu1 %964, %v500_v26   ;;  %v800_v0 = vsel %vm1987_vm8, %v1174_v21, -3.4028235e+38  ;;  %vm463_vm13 = vweird.f32 %v1573_v19  ;;  %vm464_vm9 = vweird.f32 %v1708_v32  ;;  %v1788_v21 = vpop.permute.xlu2 %560 }
  0xd7   :  { %v837_v14 = vsel %vm2043_vm1, %v800_v0, -inf  ;;  %v460_v11 = vsub.f32 1.0, %v459_v41  ;;  %v467_v46 = vand.u32 2147483647, %v1573_v19  ;;  %v469_v43 = vand.u32 2147483648, %v1573_v19  ;;  %v1790_v50 = vpop.permute.xlu1 %554  ;;  %vm1799_vm0 = vmor %vm463_vm13, %vm464_vm9 }
  0xd8   :  { %v803_v45 = vsel %vm1986_vm10, %v1187_v31, -3.4028235e+38  ;;  %v839_v47 = vmax.f32 %v837_v14, %v838_v4  ;;  %v474_v42 = vmul.f32 %v1716_v18, %v1662_v9  ;;  %vm478_vm11 = vweird.f32 %v1662_v9 }
  0xd9   :  { %v461_v52 = vmul.f32 %v1708_v32, %v460_v11  ;;  %v470_v57 = vor.u32 1.1754944e-38, %v469_v43  ;;  %vm479_vm6 = vweird.f32 %v1716_v18  ;;  %v482_v55 = vand.u32 2147483647, %v1662_v9 }
  0xda   :  { %v840_v59 = vrot.slane %v839_v47, 4  ;;  %v475_v54 = vsub.f32 1.0, %v474_v42  ;;  %v484_v61 = vand.u32 2147483648, %v1662_v9  ;;  %vm1988_vm7 = vcmp.eq.s32.totalorder %v1758_v60, 1  ;;  %vm1825_vm9 = vmor %vm478_vm11, %vm479_vm6  ;;  %v1871_v42 = vld [vmem:[#allocation5 + $0x58] sm:$0xff] }
  0xdb   :  { %v462_v48 = vadd.f32 %v1708_v32, %v461_v52  ;;  %vm468_vm1 = vcmp.eq.f32.partialorder %v467_v46, 8.507059e+37  ;;  %v806_v49 = vsel %vm1988_vm7, %v1198_v40, -3.4028235e+38  ;;  %vm1992_vm10 = vcmp.eq.s32.totalorder %v1788_v21, 1  ;;  %v1863_v46 = vld [vmem:[#allocation5 + $0x78] sm:$0xff] }
  0xdc   :  { %vm578_vm8 = vcmp.eq.s32.totalorder %v1728_v23, 1  ;;  %v841_v19 = vmax.f32 %v839_v47, %v840_v59  ;;  %v476_v1 = vmul.f32 %v1716_v18, %v475_v54  ;;  %vm1812_vm13 = vcmp.eq.f32.partialorder %v482_v55, 8.507059e+37 }
  0xdd   :  { %v466_v56 = vsel %vm1799_vm0, %v1708_v32, %v462_v48  ;;  %v485_v27 = vor.u32 1.1754944e-38, %v484_v61  ;;  %v807_v38 = vsel %vm1992_vm10, %v1196_v39, -3.4028235e+38  ;;  %vm1993_vm7 = vcmp.eq.s32.totalorder %v1730_v8, 1 }
  0xde   :  { %v471_v7 = vsel %vm468_vm1, %v470_v57, %v466_v56  ;;  %v477_v13 = vadd.f32 %v1716_v18, %v476_v1  ;;  %vm2050_vm5 = vcmask 261120   ;;  %vm2052_vm11 = vcmp.lt.s32.totalorder %v1210_v51, %v1300_v22 }
  0xdf   :  { %v864_v32 = vsel %vm2050_vm5, %v806_v49, -inf  ;;  %vm2051_vm0 = vmmov %vm2050_vm5  ;;  %v502_v9 = vsel %vm2052_vm11, %v471_v7, 0.0  ;;  %v802_v39 = vsel %vm1993_vm7, %v1839_v35, -3.4028235e+38  ;;  %vm1990_vm6 = vcmp.eq.s32.totalorder %v1816_v2, 1  ;;  %v1869_v43 = vpop.permute.xlu1 %563 }
  0xe0   :  { %v865_v3 = vsel %vm2051_vm0, %v807_v38, -inf  ;;  %vm2053_vm1 = vmmov %vm2051_vm0  ;;  %v804_v5 = vsel %vm578_vm8, %v1846_v10, -3.4028235e+38  ;;  %673 = vperm.xlu2 %965, %v502_v9   ;;  %v481_v51 = vsel %vm1825_vm9, %v1716_v18, %v477_v13  ;;  %v842_v28 = vrot.slane %v841_v19, 2 }
  0xe1   :  { %v866_v36 = vmax.f32 %v864_v32, %v865_v3  ;;  %v847_v12 = vsel %vm2053_vm1, %v803_v45, -inf  ;;  %vm2054_vm5 = vmmov %vm2051_vm0  ;;  %v486_v26 = vsel %vm1812_vm13, %v485_v27, %v481_v51  ;;  %v825_v14 = vmax.f32 %v1736_v62, %v824_v29 }
  0xe2   :  { %v846_v4 = vsel %vm2054_vm5, %v802_v39, -inf  ;;  %vm2055_vm0 = vcmp.lt.s32.totalorder %v1218_v53, %v1300_v22  ;;  %v809_v18 = vsel %vm1990_vm6, %v1863_v46, -3.4028235e+38  ;;  %vm579_vm9 = vcmp.eq.s32.totalorder %v1790_v50, 1  ;;  %vm2056_vm13 = vmmov %vm2053_vm1 }
  0xe3   :  { %v867_v41 = vrot.slane %v866_v36, 4  ;;  %v848_v0 = vmax.f32 %v846_v4, %v847_v12  ;;  %v503_v11 = vsel %vm2055_vm0, %v486_v26, 0.0  ;;  %v805_v53 = vsel %vm579_vm9, %v1871_v42, -3.4028235e+38  ;;  %vm2057_vm11 = vmmov %vm2053_vm1 }
  0xe4   :  { %678 = vperm.xlu1 %964, %v503_v11   ;;  %v816_v22 = vmax.f32 %v1732_v15, %v815_v20  ;;  %v834_v62 = vmax.f32 %v1753_v30, %v833_v6  ;;  %v855_v29 = vsel %vm2056_vm13, %v804_v5, -inf  ;;  %v856_v52 = vsel %vm2057_vm11, %v805_v53, -inf  ;;  %vm2058_vm0 = vmmov %vm2053_vm1  ;;  %v1887_v15 = vld [vmem:[#allocation5 + $0x70] sm:$0xff] }
  0xe5   :  { %v868_v45 = vmax.f32 %v866_v36, %v867_v41  ;;  %v849_v47 = vrot.slane %v848_v0, 4  ;;  %v1104_v57 = vmov -3.4028235e+38   ;;  %v843_v55 = vmax.f32 %v841_v19, %v842_v28  ;;  %vm2059_vm13 = vmmov %vm2058_vm0 }
  0xe6   :  { %41 = vst.msk [vmem:[#allocation3] sm:$0xff] %vm2053_vm1, %v1104_v57  ;;  %v857_v31 = vmax.f32 %v855_v29, %v856_v52  ;;  %vm1991_vm5 = vcmp.eq.s32.totalorder %v1869_v43, 1  ;;  %v826_v54 = vrot.slane %v825_v14, 1  ;;  %v874_v61 = vsel %vm2058_vm0, %v809_v18, -inf }
  0xe7   :  { %v850_v59 = vmax.f32 %v848_v0, %v849_v47  ;;  %v808_v30 = vsel %vm1991_vm5, %v1887_v15, -3.4028235e+38  ;;  %v869_v20 = vrot.slane %v868_v45, 2  ;;  %v835_v1 = vrot.slane %v834_v62, 1 }
  0xe8   :  { %v858_v48 = vrot.slane %v857_v31, 4  ;;  %v873_v49 = vsel %vm2059_vm13, %v808_v30, -inf  ;;  %v817_v17 = vrot.slane %v816_v22, 1  ;;  %v844_v56 = vrot.slane %v843_v55, 1 }
  0xe9   :  { %v851_v6 = vrot.slane %v850_v59, 2  ;;  %v875_v19 = vmax.f32 %v873_v49, %v874_v61  ;;  %v827_v7 = vmax.f32 %v825_v14, %v826_v54  ;;  %v870_v13 = vmax.f32 %v868_v45, %v869_v20  ;;  %v1037_v20 = vld [vmem:[#allocation5 + $0x18] sm:$0xff]  ;;  %v1038_v49 = vld [vmem:[#allocation5 + $0x10] sm:$0xff] }
  0xea   :  { %v859_v27 = vmax.f32 %v857_v31, %v858_v48  ;;  %vm777_vm11 = vcmask 1041409   ;;  %v836_v9 = vmax.f32 %v834_v62, %v835_v1  ;;  %v818_v39 = vmax.f32 %v816_v22, %v817_v17 }
  0xeb   :  { %v852_v40 = vmax.f32 %v850_v59, %v851_v6  ;;  %v876_v38 = vrot.slane %v875_v19, 4  ;;  %vm779_vm1 = vcmask 1042434   ;;  %v845_v12 = vmax.f32 %v843_v55, %v844_v56  ;;  %v909_v59 = vpop.permute.xlu1 %908 }
  0xec   :  { %v860_v3 = vrot.slane %v859_v27, 2  ;;  %vm1994_vm0 = vcmask 1043459   ;;  %v891_v28 = vsel %vm777_vm11, %v827_v7, %v818_v39  ;;  %v871_v26 = vrot.slane %v870_v13, 1  ;;  %v1039_v7 = vld [vmem:[#allocation5 + $0x28] sm:$0xff] }
  0xed   :  { %v853_v32 = vrot.slane %v852_v40, 1  ;;  %v877_v36 = vmax.f32 %v875_v19, %v876_v38  ;;  %vm783_vm13 = vcmask 1044484   ;;  %v892_v0 = vsel %vm779_vm1, %v836_v9, %v891_v28  ;;  %v882_v29 = vld [vmem:[#allocation3] sm:$0xff] }
  0xee   :  { %v861_v5 = vmax.f32 %v859_v27, %v860_v3  ;;  %vm785_vm6 = vcmask 1045509   ;;  %v893_v11 = vsel %vm1994_vm0, %v845_v12, %v892_v0  ;;  %vm787_vm5 = vcmask 1046534  }
  0xef   :  { %v854_v51 = vmax.f32 %v852_v40, %v853_v32  ;;  %v878_v4 = vrot.slane %v877_v36, 2  ;;  %v872_v53 = vmax.f32 %v870_v13, %v871_v26  ;;  %vm1995_vm10 = vcmask 1047559  }
  0xf0   :  { %v862_v41 = vrot.slane %v861_v5, 1  ;;  %vm2060_vm7 = vcmask 261120   ;;  %vm910_vm0 = vcmp.eq.s32.totalorder %v909_v59, 1  ;;  %v587_v6 = vsel %vm571_vm2, %v1037_v20, 0.0 }
  0xf1   :  { %v879_v14 = vmax.f32 %v877_v36, %v878_v4  ;;  %v894_v45 = vsel %vm783_vm13, %v854_v51, %v893_v11  ;;  %v586_v1 = vsel %vm570_vm15, %v1038_v49, 0.0  ;;  %v589_v13 = vsel %vm573_vm4, %v1039_v7, 0.0  ;;  %vm2062_vm2 = vmmov %vm2060_vm7  ;;  %v1041_v51 = vld [vmem:[#allocation5] sm:$0xff]  ;;  %v1044_v49 = vld [vmem:[#allocation5 + $0x30] sm:$0xff] }
  0xf2   :  { %v863_v18 = vmax.f32 %v861_v5, %v862_v41  ;;  %v588_v3 = vsel %vm572_vm3, %v1040_v33, 0.0  ;;  %vm2063_vm15 = vmmov %vm2062_vm2  ;;  %v584_v4 = vsel %vm568_vm12, %v1041_v51, 0.0  ;;  %v1042_v41 = vld [vmem:[#allocation5 + $0x8] sm:$0xff]  ;;  %vm2067_vm12 = vcmp.eq.s32.totalorder %v1678_v34, 1 }
  0xf3   :  { %v880_v47 = vrot.slane %v879_v14, 1  ;;  %v585_v16 = vsel %vm569_vm14, %v1042_v41, 0.0  ;;  %vm2064_vm4 = vmmov %vm2062_vm2  ;;  %vm2066_vm14 = vcmp.eq.s32.totalorder %v1675_v58, 1  ;;  %v595_v58 = vsel %vm579_vm9, %v1871_v42, 0.0 }
  0xf4   :  { %v895_v22 = vsel %vm785_vm6, %v863_v18, %v894_v45  ;;  %vm2065_vm3 = vmmov %vm2062_vm2  ;;  %v594_v34 = vsel %vm578_vm8, %v1846_v10, 0.0  ;;  %vm2072_vm9 = vcmp.eq.s32.totalorder %v1730_v8, 1  ;;  %vm2073_vm8 = vcmp.eq.s32.totalorder %v1695_v44, 1 }
  0xf5   :  { %v881_v62 = vmax.f32 %v879_v14, %v880_v47  ;;  %v896_v52 = vsel %vm787_vm5, %v872_v53, %v895_v22 }
  0xf7   :  { %v897_v57 = vsel %vm1995_vm10, %v881_v62, %v896_v52  ;;  %vm2061_vm10 = vmmov %vm2060_vm7 }
  0xf8   :  { %v899_v55 = vmax.f32 %v882_v29, %v897_v57 }
  0xfa   :  { %900 = vst.msk [vmem:[#allocation3] sm:$0xff] %vm2060_vm7, %v899_v55  ;;  %v604_v54 = vpop.permute.xlu2 %603 }
  0xfb   :  { %v681_v28 = vmul.f32 %v604_v54, %v584_v4 }
  0xfd   :  { %v697_v18 = vsel %vm2064_vm4, %v681_v28, 0.0  ;;  %vm2077_vm4 = vcmask 1043459  }
 0x101   :  { %v905_v31 = vld [vmem:[#allocation3] sm:$0xff] }
 0x102   :  { %v911_v61 = vsel %vm910_vm0, %v905_v31, 0.0  ;;  %v1043_v31 = vld [vmem:[#allocation5 + $0x38] sm:$0xff]  ;;  %vm2069_vm0 = vmmov %vm2062_vm2 }
 0x103   :  { %914 = vrot.lane.b32.xlu0 %v911_v61, %s1105_s3  ;;  %v591_v37 = vsel %vm2066_vm14, %v1043_v31, 0.0  ;;  %vm2079_vm14 = vcmp.eq.s32.totalorder %v1758_v60, 1 }
 0x104   :  { %v619_v30 = vpop.permute.xlu2 %618 }
 0x105   :  { %v684_v48 = vmul.f32 %v619_v30, %v587_v6 }
 0x107   :  { %v707_v56 = vsel %vm2060_vm7, %v684_v48, 0.0  ;;  %vm2070_vm7 = vmmov %vm2069_vm0 }
 0x111   :  { %v614_v19 = vpop.permute.xlu0 %613 }
 0x112   :  { %v683_v17 = vmul.f32 %v614_v19, %v586_v1  ;;  %v629_v27 = vpop.permute.xlu2 %628  ;;  %v590_v1 = vsel %vm2067_vm12, %v1044_v49, 0.0  ;;  %vm2080_vm12 = vmmov %vm2069_vm0 }
 0x113   :  { %v686_v32 = vmul.f32 %v629_v27, %v589_v13 }
 0x114   :  { %v706_v40 = vsel %vm2061_vm10, %v683_v17, 0.0  ;;  %vm2068_vm10 = vmmov %vm2062_vm2 }
 0x115   :  { %v708_v38 = vadd.f32 %v707_v56, %v706_v40  ;;  %v716_v36 = vsel %vm2062_vm2, %v686_v32, 0.0  ;;  %vm2071_vm2 = vmmov %vm2069_vm0 }
 0x117   :  { %v709_v39 = vrot.slane %v708_v38, 4 }
 0x119   :  { %v624_v9 = vpop.permute.xlu0 %623  ;;  %v710_v26 = vadd.f32 %v709_v39, %v708_v38 }
 0x11a   :  { %v685_v25 = vmul.f32 %v624_v9, %v588_v3 }
 0x11b   :  { %v711_v22 = vrot.slane %v710_v26, 2 }
 0x11c   :  { %v715_v12 = vsel %vm2063_vm15, %v685_v25, 0.0  ;;  %vm2076_vm15 = vmmov %vm2069_vm0 }
 0x11d   :  { %v717_v5 = vadd.f32 %v716_v36, %v715_v12  ;;  %v712_v52 = vadd.f32 %v711_v22, %v710_v26 }
 0x11e   :  { %v609_v0 = vpop.permute.xlu1 %608 }
 0x11f   :  { %v718_v63 = vrot.slane %v717_v5, 4  ;;  %v682_v14 = vmul.f32 %v609_v0, %v585_v16  ;;  %v713_v30 = vrot.slane %v712_v52, 1 }
 0x120   :  { %v644_v53 = vpop.permute.xlu2 %643 }
 0x121   :  { %v719_v11 = vadd.f32 %v718_v63, %v717_v5  ;;  %v698_v45 = vsel %vm2065_vm3, %v682_v14, 0.0  ;;  %v714_v27 = vadd.f32 %v713_v30, %v712_v52  ;;  %v592_v5 = vsel %vm2072_vm9, %v1839_v35, 0.0  ;;  %v1045_v63 = vld [vmem:[#allocation5 + $0x48] sm:$0xff] }
 0x122   :  { %v699_v62 = vadd.f32 %v698_v45, %v697_v18  ;;  %v689_v28 = vmul.f32 %v644_v53, %v592_v5  ;;  %v593_v26 = vsel %vm2073_vm8, %v1045_v63, 0.0  ;;  %v1106_v14 = vmov 0.0   ;;  %v1046_v52 = vld [vmem:[#allocation5 + $0x68] sm:$0xff] }
 0x123   :  { %v720_v47 = vrot.slane %v719_v11, 2  ;;  %vm2078_vm3 = vcmp.eq.s32.totalorder %v1788_v21, 1  ;;  %vm918_vm8 = vcmask 523264  }
 0x124   :  { %v700_v24 = vrot.slane %v699_v62, 4  ;;  %v639_v55 = vpop.permute.xlu0 %638 }
 0x125   :  { %v721_v29 = vadd.f32 %v720_v47, %v719_v11  ;;  %v688_v61 = vmul.f32 %v639_v55, %v591_v37 }
 0x126   :  { %v701_v57 = vadd.f32 %v700_v24, %v699_v62 }
 0x127   :  { %v722_v54 = vrot.slane %v721_v29, 1  ;;  %v725_v40 = vsel %vm2068_vm10, %v688_v61, 0.0  ;;  %v1047_v61 = vld [vmem:[#allocation5 + $0x60] sm:$0xff]  ;;  %vm2081_vm10 = vmmov %vm2069_vm0 }
 0x128   :  { %v702_v59 = vrot.slane %v701_v57, 2  ;;  %v596_v30 = vsel %vm2079_vm14, %v1047_v61, 0.0 }
 0x129   :  { %v723_v17 = vadd.f32 %v722_v54, %v721_v29 }
 0x12a   :  { %v703_v20 = vadd.f32 %v702_v59, %v701_v57  ;;  %v597_v57 = vsel %vm2078_vm3, %v1046_v52, 0.0 }
 0x12c   :  { %v704_v48 = vrot.slane %v703_v20, 1 }
 0x12d   :  { %v634_v19 = vpop.permute.xlu1 %633 }
 0x12e   :  { %v659_v6 = vpop.permute.xlu2 %658  ;;  %v687_v56 = vmul.f32 %v634_v19, %v590_v1  ;;  %v705_v38 = vadd.f32 %v704_v48, %v703_v20 }
 0x12f   :  { %v692_v7 = vmul.f32 %v659_v6, %v595_v58 }
 0x130   :  { %v724_v13 = vsel %vm2069_vm0, %v687_v56, 0.0  ;;  %v778_v32 = vsel %vm777_vm11, %v714_v27, %v705_v38  ;;  %vm2074_vm11 = vmmov %vm2069_vm0 }
 0x131   :  { %v726_v33 = vadd.f32 %v725_v40, %v724_v13  ;;  %v654_v3 = vpop.permute.xlu0 %653  ;;  %v780_v9 = vsel %vm779_vm1, %v723_v17, %v778_v32  ;;  %v743_v39 = vsel %vm2070_vm7, %v692_v7, 0.0  ;;  %40 = vst.msk [vmem:[#allocation2] sm:$0xff] %vm2074_vm11, %v1106_v14  ;;  %vm2075_vm1 = vmmov %vm2069_vm0  ;;  %vm2082_vm0 = vcmp.eq.s32.totalorder %v1869_v43, 1 }
 0x132   :  { %v691_v25 = vmul.f32 %v654_v3, %v594_v34  ;;  %v733_v11 = vsel %vm2075_vm1, %v689_v28, 0.0  ;;  %v598_v60 = vsel %vm2082_vm0, %v1887_v15, 0.0  ;;  %vm2083_vm7 = vcmp.eq.s32.totalorder %v1816_v2, 1  ;;  %vm2087_vm9 = vmmov %vm2075_vm1 }
 0x133   :  { %v727_v36 = vrot.slane %v726_v33, 4  ;;  %v599_v13 = vsel %vm2083_vm7, %v1863_v46, 0.0  ;;  %vm2088_vm11 = vmmov %vm2075_vm1 }
 0x134   :  { %v742_v50 = vsel %vm2071_vm2, %v691_v25, 0.0  ;;  %vm2086_vm2 = vcmask 1047559  }
 0x135   :  { %v728_v42 = vadd.f32 %v727_v36, %v726_v33  ;;  %v744_v12 = vadd.f32 %v743_v39, %v742_v50 }
 0x137   :  { %v729_v51 = vrot.slane %v728_v42, 2  ;;  %v745_v4 = vrot.slane %v744_v12, 4 }
 0x139   :  { %v730_v23 = vadd.f32 %v729_v51, %v728_v42  ;;  %v746_v41 = vadd.f32 %v745_v4, %v744_v12  ;;  %v600_v12 = vld [vmem:[#allocation2] sm:$0xff] }
 0x13a   :  { %v649_v10 = vpop.permute.xlu1 %648  ;;  %v674_v40 = vpop.permute.xlu2 %673 }
 0x13b   :  { %v690_v16 = vmul.f32 %v649_v10, %v593_v26  ;;  %v731_v0 = vrot.slane %v730_v23, 1  ;;  %v747_v35 = vrot.slane %v746_v41, 2  ;;  %v695_v58 = vmul.f32 %v674_v40, %v598_v60 }
 0x13d   :  { %v734_v8 = vsel %vm2076_vm15, %v690_v16, 0.0  ;;  %v732_v18 = vadd.f32 %v731_v0, %v730_v23  ;;  %v748_v22 = vadd.f32 %v747_v35, %v746_v41 }
 0x13e   :  { %v735_v45 = vadd.f32 %v734_v8, %v733_v11 }
 0x13f   :  { %v782_v47 = vsel %vm2077_vm4, %v732_v18, %v780_v9  ;;  %v749_v29 = vrot.slane %v748_v22, 1 }
 0x140   :  { %v736_v53 = vrot.slane %v735_v45, 4 }
 0x141   :  { %v750_v37 = vadd.f32 %v749_v29, %v748_v22 }
 0x142   :  { %v737_v62 = vadd.f32 %v736_v53, %v735_v45 }
 0x144   :  { %v738_v44 = vrot.slane %v737_v62, 2  ;;  %v669_v24 = vpop.permute.xlu0 %668 }
 0x145   :  { %v694_v59 = vmul.f32 %v669_v24, %v597_v57 }
 0x146   :  { %v739_v55 = vadd.f32 %v738_v44, %v737_v62 }
 0x147   :  { %v752_v48 = vsel %vm2080_vm12, %v694_v59, 0.0 }
 0x148   :  { %v740_v31 = vrot.slane %v739_v55, 1  ;;  %v664_v54 = vpop.permute.xlu1 %663 }
 0x149   :  { %v693_v6 = vmul.f32 %v664_v54, %v596_v30 }
 0x14a   :  { %v741_v20 = vadd.f32 %v740_v31, %v739_v55 }
 0x14b   :  { %v751_v1 = vsel %vm2081_vm10, %v693_v6, 0.0 }
 0x14c   :  { %v784_v49 = vsel %vm783_vm13, %v741_v20, %v782_v47  ;;  %v753_v19 = vadd.f32 %v752_v48, %v751_v1  ;;  %vm2084_vm13 = vmmov %vm2075_vm1 }
 0x14d   :  { %v786_v21 = vsel %vm785_vm6, %v750_v37, %v784_v49  ;;  %v760_v34 = vsel %vm2084_vm13, %v695_v58, 0.0  ;;  %vm2085_vm6 = vmmov %vm2075_vm1 }
 0x14e   :  { %v754_v17 = vrot.slane %v753_v19, 4 }
 0x150   :  { %v755_v56 = vadd.f32 %v754_v17, %v753_v19 }
 0x152   :  { %v756_v27 = vrot.slane %v755_v56, 2 }
 0x154   :  { %v757_v38 = vadd.f32 %v756_v27, %v755_v56 }
 0x156   :  { %v679_v7 = vpop.permute.xlu1 %678  ;;  %v758_v32 = vrot.slane %v757_v38, 1 }
 0x157   :  { %v696_v33 = vmul.f32 %v679_v7, %v599_v13 }
 0x158   :  { %v759_v3 = vadd.f32 %v758_v32, %v757_v38 }
 0x159   :  { %v761_v9 = vsel %vm2085_vm6, %v696_v33, 0.0 }
 0x15a   :  { %v762_v25 = vadd.f32 %v761_v9, %v760_v34  ;;  %v788_v36 = vsel %vm787_vm5, %v759_v3, %v786_v21 }
 0x15c   :  { %v763_v39 = vrot.slane %v762_v25, 4 }
 0x15e   :  { %v764_v43 = vadd.f32 %v763_v39, %v762_v25 }
 0x160   :  { %v765_v15 = vrot.slane %v764_v43, 2 }
 0x162   :  { %v766_v50 = vadd.f32 %v765_v15, %v764_v43 }
 0x164   :  { %v767_v42 = vrot.slane %v766_v50, 1 }
 0x166   :  { %v768_v5 = vadd.f32 %v767_v42, %v766_v50 }
 0x168   :  { %v790_v2 = vsel %vm2086_vm2, %v768_v5, %v788_v36 }
 0x169   :  { %v792_v46 = vadd.f32 %v790_v2, %v600_v12 }
 0x16b   :  { %793 = vst.msk [vmem:[#allocation2] sm:$0xff] %vm2087_vm9, %v792_v46 }
 0x172   :  { %v912_v4 = vld [vmem:[#allocation2] sm:$0xff] }
 0x175   :  { %v915_v51 = vpop.permute.xlu0 %914 }
 0x176   :  { %v917_v28 = vsel %vm2088_vm11, %v912_v4, %v915_v51 }
 0x177   :  { %919 = vst.msk [vmem:[#allocation8] sm:$0xff] %vm918_vm8, %v917_v28 }
 0x178   :  { %923 = vsyncadd [#allocation7], 96  ;;  %s926_s27 = sshll.u32 %s1974_s4, 4  ;;  %s1107_s28 = smov [#allocation8]   ;;  %s927_s27 = int_to_ptr.hbm [resolvable:$true] %s926_s27 }
 0x179   :  { %s924_s29 = sshll.u32 %s1107_s28, 4  ;;  %s1108_s30 = smov 2   ;;  %s925_s29 = int_to_ptr.vmem [resolvable:$true] %s924_s29 }
 0x17a   :  { %932 = dma.vmem_to_hbm [thread:$0]  %s925_s29, 32, %s927_s27, [#allocation7], %s1105_s3, %s1105_s3, %s1108_s30  }
 0x17b   :  { %1098 = dma.done.wait [#allocation7], 128  }
 0x17c   :  { %1099 = vsyncadd [#allocation7], 4294967168 }
 0x17d   :  { %937 = vsyncpa [#allocation6], 1 }
 0x17e   :  { %938 = vsyncpa [#allocation7], 1 }

</bundles_post_ra>
